<compile_context>
chip_gen: v5e
topology: v5e:2x2
jax: 0.10.0
libtpu: 0.0.40
codegen_flags: <defaults>
</compile_context>

<pallas_src>
import functools

import jax
import jax.numpy as jnp
from jax.experimental import pallas as pl
from jax.experimental.pallas import tpu as pltpu

HIDDEN = 128
IN_DIM = 2  # concat of 1-d context_x and 1-d context_y


def _encoder_kernel(cx_ref, cy_ref,
                    w1_ref, b1_ref,
                    w2_ref, b2_ref,
                    w3_ref, b3_ref,
                    w4_ref, b4_ref,
                    out_ref, *, bt, s, inv_s, bf16_epilogue):
    # cx_ref / cy_ref: (bt*s, 1) f32 rows for the current batch tile.
    x = cx_ref[...]
    y = cy_ref[...]

    # fc1: in_features == 2, so a K=2 MXU matmul would waste >= 98% of the
    # contraction dimension.  Do it on the VPU as two broadcast multiply-adds.
    h = x * w1_ref[0:1, :] + y * w1_ref[1:2, :] + b1_ref[...]     # (bt*s, 128)
    h = jnp.maximum(h, 0.0)

    act = jnp.bfloat16 if bf16_epilogue else jnp.float32

    def layer(h_in, w_ref, b_ref, out_f32):
        # MXU matmul: bf16 operands, f32 accumulation.
        acc = jnp.dot(h_in.astype(jnp.bfloat16), w_ref[...],
                      preferred_element_type=jnp.float32)
        if out_f32:
            return jnp.maximum(acc + b_ref[...], 0.0)
        # bf16 bias+ReLU epilogue (v6e/v7x): halves inter-layer VMEM traffic
        # and vreg footprint; next layer's bf16 cast becomes a no-op.
        return jnp.maximum(acc.astype(act) + b_ref[...].astype(act), 0.0)

    h = layer(h, w2_ref, b2_ref, out_f32=not bf16_epilogue)
    h = layer(h, w3_ref, b3_ref, out_f32=not bf16_epilogue)
    h = layer(h, w4_ref, b4_ref, out_f32=True)   # keep f32 into the set-mean

    # Mean over the set dimension: sublane-axis sum (XLU) * precomputed 1/S.
    # When S % 8 == 0 the (bt*S,128)->(bt,S,128) view is tile-aligned and
    # layout-preserving; for S % 8 != 0 Mosaic may insert a relayout (correct,
    # just slower).
    h = h.reshape(bt, s, HIDDEN)
    out_ref[...] = jnp.sum(h, axis=1) * inv_s


def _tpu_flavor():
    """Returns (num_tensorcores_per_chip, has_bf16_vpu) from the device kind."""
    try:
        kind = jax.devices()[0].device_kind.lower()
    except Exception:
        return 1, False
    is_v7 = "v7" in kind
    has_bf16_vpu = is_v7 or "v6" in kind
    return (2 if is_v7 else 1), has_bf16_vpu


def _choose_batch_tile(batch, set_size, *, max_rows=4096, min_steps=1):
    """Pick bt = batch elements per grid step.

    Only 8-aligned (or full-batch) tiles are legal under the (8,128) sublane
    rule for the (bt,128) output block and (bt*S,1) input blocks.  Among
    those, prefer enough grid steps for multi-TC chips (v7x), then the largest
    tile with bt*S <= max_rows so the (rows,128) intermediates stay ~2 MiB and
    per-step overhead (~0.35 us) is well amortized.
    """
    divisors = [d for d in range(1, batch + 1) if batch % d == 0]
    aligned = [d for d in divisors if d == batch or d % 8 == 0]
    # Step preferences: e.g. v7x -> [4, 2, 1]; single-TC chips -> [1].
    step_prefs = [min_steps]
    if min_steps > 2:
        step_prefs.append(2)
    if min_steps > 1:
        step_prefs.append(1)
    for steps in step_prefs:
        cands = [d for d in aligned
                 if batch // d >= steps and d * set_size <= max_rows]
        if cands:
            return max(cands)
    # No aligned tile fits under the row cap (very large S): take the smallest
    # legal tile to minimise VMEM; correctness over the cap.
    # TODO(synk): tile the set dimension too for extremely large S.
    return min(aligned)


@jax.jit
def encoder_forward(context_x, context_y, params):
    """context_x, context_y: (B, S, 1) f32 -> (B, 128) f32."""
    B, S, _ = context_x.shape
    # Flat row views — contiguous reshapes, no concat / extra HBM pass.
    cx = context_x.reshape(B * S, 1)
    cy = context_y.reshape(B * S, 1)

    w1, b1, w2, b2, w3, b3, w4, b4 = params
    # fc1 weight stays f32 (VPU path); fc2-4 feed the MXU in bf16.
    w2 = w2.astype(jnp.bfloat16)
    w3 = w3.astype(jnp.bfloat16)
    w4 = w4.astype(jnp.bfloat16)
    # Biases as (1, 128) rows so they sit on a clean (sublane, lane) tile.
    b1, b2, b3, b4 = (b.reshape(1, HIDDEN) for b in (b1, b2, b3, b4))

    num_tc, has_bf16_vpu = _tpu_flavor()
    bt = _choose_batch_tile(B, S, max_rows=4096,
                            min_steps=4 if num_tc > 1 else 1)
    rows = bt * S

    full = lambda shape: pl.BlockSpec(shape, lambda i: (0, 0))
    kernel = functools.partial(_encoder_kernel, bt=bt, s=S, inv_s=1.0 / S,
                               bf16_epilogue=has_bf16_vpu)

    return pl.pallas_call(
        kernel,
        out_shape=jax.ShapeDtypeStruct((B, HIDDEN), jnp.float32),
        grid_spec=pltpu.PrefetchScalarGridSpec(
            num_scalar_prefetch=0,
            grid=(B // bt,),
            in_specs=[
                pl.BlockSpec((rows, 1), lambda i: (i, 0)),          # context_x rows
                pl.BlockSpec((rows, 1), lambda i: (i, 0)),          # context_y rows
                full((IN_DIM, HIDDEN)), full((1, HIDDEN)),          # fc1 (f32, VPU)
                full((HIDDEN, HIDDEN)), full((1, HIDDEN)),          # fc2 (bf16, MXU)
                full((HIDDEN, HIDDEN)), full((1, HIDDEN)),          # fc3
                full((HIDDEN, HIDDEN)), full((1, HIDDEN)),          # fc4
            ],
            out_specs=pl.BlockSpec((bt, HIDDEN), lambda i: (i, 0)),
        ),
        compiler_params=pltpu.CompilerParams(
            dimension_semantics=("parallel",),
            # Explicit scoped-VMEM headroom (v5e's default is only 16 MiB);
            # well under physical VMEM on every generation (v7x: 64 MiB/TC).
            vmem_limit_bytes=32 * 1024 * 1024,
        ),
    )(cx, cy, w1, b1, w2, b2, w3, b3, w4, b4)


def init_params(key):
    """Deterministic synthetic parameters matching nn.Linear shapes (f32)."""
    ks = jax.random.split(key, 8)

    def lin(kw, kb, fan_in, fan_out):
        bound = 1.0 / jnp.sqrt(fan_in)
        w = jax.random.uniform(kw, (fan_in, fan_out), jnp.float32, -bound, bound)
        b = jax.random.uniform(kb, (fan_out,), jnp.float32, -bound, bound)
        return w, b

    w1, b1 = lin(ks[0], ks[1], IN_DIM, HIDDEN)
    w2, b2 = lin(ks[2], ks[3], HIDDEN, HIDDEN)
    w3, b3 = lin(ks[4], ks[5], HIDDEN, HIDDEN)
    w4, b4 = lin(ks[6], ks[7], HIDDEN, HIDDEN)
    return (w1, b1, w2, b2, w3, b3, w4, b4)


def _reference(context_x, context_y, params):
    """Pure-JAX f32 reference mirroring the PyTorch forward exactly."""
    w1, b1, w2, b2, w3, b3, w4, b4 = params
    xy = jnp.concatenate([context_x, context_y], axis=-1)
    B, S, F = xy.shape
    x = xy.reshape(B * S, F)
    x = jax.nn.relu(x @ w1 + b1)
    x = jax.nn.relu(x @ w2 + b2)
    x = jax.nn.relu(x @ w3 + b3)
    x = jax.nn.relu(x @ w4 + b4)
    return x.reshape(B, S, HIDDEN).mean(axis=1)


if __name__ == "__main__":
    key = jax.random.PRNGKey(0)
    kx, ky, kp = jax.random.split(key, 3)
    params = init_params(kp)

    # Small shapes consistent with the module: (B, S, 1) contexts.
    B, S = 2, 8
    context_x = jax.random.normal(kx, (B, S, 1), jnp.float32)
    context_y = jax.random.normal(ky, (B, S, 1), jnp.float32)

    out = jax.block_until_ready(encoder_forward(context_x, context_y, params))
    ref = _reference(context_x, context_y, params)
    assert out.shape == (B, HIDDEN)
    # bf16 MXU operands / bf16 epilogues vs pure-f32 reference -> loose tol.
    assert jnp.allclose(out, ref, atol=3e-2, rtol=3e-2), "mismatch vs reference"

    # Larger batch: exercises the 8-aligned (bt, 128) output-block path.
    B2, S2 = 8, 32
    kx2, ky2 = jax.random.split(kx)
    cx2 = jax.random.normal(kx2, (B2, S2, 1), jnp.float32)
    cy2 = jax.random.normal(ky2, (B2, S2, 1), jnp.float32)
    out2 = jax.block_until_ready(encoder_forward(cx2, cy2, params))
    ref2 = _reference(cx2, cy2, params)
    assert out2.shape == (B2, HIDDEN)
    assert jnp.allclose(out2, ref2, atol=3e-2, rtol=3e-2), "mismatch (B=8)"

    # Big enough that the 4096-row cap splits the grid into multiple steps.
    B3, S3 = 16, 512
    kx3, ky3 = jax.random.split(ky)
    cx3 = jax.random.normal(kx3, (B3, S3, 1), jnp.float32)
    cy3 = jax.random.normal(ky3, (B3, S3, 1), jnp.float32)
    out3 = jax.block_until_ready(encoder_forward(cx3, cy3, params))
    ref3 = _reference(cx3, cy3, params)
    assert out3.shape == (B3, HIDDEN)
    assert jnp.allclose(out3, ref3, atol=3e-2, rtol=3e-2), "mismatch (tiled grid)"

    print("KERNEL_OK")
</pallas_src>

<mosaic_0001>
module attributes {stable_mosaic.version = 11 : i64} {
  func.func @_encoder_kernel(%arg0: i32, %arg1: memref<16x1xf32, #tpu.memory_space<vmem>>, %arg2: memref<16x1xf32, #tpu.memory_space<vmem>>, %arg3: memref<2x128xf32, #tpu.memory_space<vmem>>, %arg4: memref<1x128xf32, #tpu.memory_space<vmem>>, %arg5: memref<128x128xbf16, #tpu.memory_space<vmem>>, %arg6: memref<1x128xf32, #tpu.memory_space<vmem>>, %arg7: memref<128x128xbf16, #tpu.memory_space<vmem>>, %arg8: memref<1x128xf32, #tpu.memory_space<vmem>>, %arg9: memref<128x128xbf16, #tpu.memory_space<vmem>>, %arg10: memref<1x128xf32, #tpu.memory_space<vmem>>, %arg11: memref<2x128xf32, #tpu.memory_space<vmem>>) attributes {dimension_semantics = [#tpu.dimension_semantics<parallel>], iteration_bounds = array<i64: 1>, scalar_prefetch = 0 : i64, scratch_operands = 0 : i64, tpu.core_type = #tpu.core_type<tc>, window_params = [{transform_indices = @transform_0, window_bounds = array<i64: 16, 1>}, {transform_indices = @transform_1, window_bounds = array<i64: 16, 1>}, {pipeline_mode = #tpu.pipeline_mode<synchronous>, transform_indices = @transform_2, window_bounds = array<i64: 2, 128>}, {pipeline_mode = #tpu.pipeline_mode<synchronous>, transform_indices = @transform_3, window_bounds = array<i64: 1, 128>}, {pipeline_mode = #tpu.pipeline_mode<synchronous>, transform_indices = @transform_4, window_bounds = array<i64: 128, 128>}, {pipeline_mode = #tpu.pipeline_mode<synchronous>, transform_indices = @transform_5, window_bounds = array<i64: 1, 128>}, {pipeline_mode = #tpu.pipeline_mode<synchronous>, transform_indices = @transform_6, window_bounds = array<i64: 128, 128>}, {pipeline_mode = #tpu.pipeline_mode<synchronous>, transform_indices = @transform_7, window_bounds = array<i64: 1, 128>}, {pipeline_mode = #tpu.pipeline_mode<synchronous>, transform_indices = @transform_8, window_bounds = array<i64: 128, 128>}, {pipeline_mode = #tpu.pipeline_mode<synchronous>, transform_indices = @transform_9, window_bounds = array<i64: 1, 128>}, {transform_indices = @transform_10, window_bounds = array<i64: 2, 128>}]} {
    %c0 = arith.constant 0 : index
    %c0_0 = arith.constant 0 : index
    %0 = vector.load %arg1[%c0, %c0_0] : memref<16x1xf32, #tpu.memory_space<vmem>>, vector<16x1xf32>
    %c0_1 = arith.constant 0 : index
    %c0_2 = arith.constant 0 : index
    %1 = vector.load %arg2[%c0_1, %c0_2] : memref<16x1xf32, #tpu.memory_space<vmem>>, vector<16x1xf32>
    %c0_3 = arith.constant 0 : index
    %c0_4 = arith.constant 0 : index
    %2 = vector.load %arg3[%c0_3, %c0_4] : memref<2x128xf32, #tpu.memory_space<vmem>>, vector<1x128xf32>
    %3 = vector.broadcast %0 : vector<16x1xf32> to vector<16x128xf32>
    %4 = vector.broadcast %2 : vector<1x128xf32> to vector<16x128xf32>
    %5 = arith.mulf %3, %4 : vector<16x128xf32>
    %c1 = arith.constant 1 : index
    %c0_5 = arith.constant 0 : index
    %6 = vector.load %arg3[%c1, %c0_5] : memref<2x128xf32, #tpu.memory_space<vmem>>, vector<1x128xf32>
    %7 = vector.broadcast %1 : vector<16x1xf32> to vector<16x128xf32>
    %8 = vector.broadcast %6 : vector<1x128xf32> to vector<16x128xf32>
    %9 = arith.mulf %7, %8 : vector<16x128xf32>
    %10 = arith.addf %5, %9 : vector<16x128xf32>
    %c0_6 = arith.constant 0 : index
    %c0_7 = arith.constant 0 : index
    %11 = vector.load %arg4[%c0_6, %c0_7] : memref<1x128xf32, #tpu.memory_space<vmem>>, vector<1x128xf32>
    %12 = vector.broadcast %11 : vector<1x128xf32> to vector<16x128xf32>
    %13 = arith.addf %10, %12 : vector<16x128xf32>
    %cst = arith.constant 0.000000e+00 : f32
    %14 = vector.broadcast %cst : f32 to vector<16x128xf32>
    %15 = arith.maximumf %13, %14 : vector<16x128xf32>
    %16 = arith.truncf %15 : vector<16x128xf32> to vector<16x128xbf16>
    %c0_8 = arith.constant 0 : index
    %c0_9 = arith.constant 0 : index
    %17 = vector.load %arg5[%c0_8, %c0_9] : memref<128x128xbf16, #tpu.memory_space<vmem>>, vector<128x128xbf16>
    %cst_10 = arith.constant dense<0.000000e+00> : vector<16x128xf32>
    %18 = tpu.matmul %16, %17, %cst_10 {dimension_numbers = #tpu.dot_dimension_numbers<[1], [0], [0], [1], [0, 0, 1, 1], [], []>} : vector<16x128xbf16>, vector<128x128xbf16>, vector<16x128xf32> -> vector<16x128xf32>
    %c0_11 = arith.constant 0 : index
    %c0_12 = arith.constant 0 : index
    %19 = vector.load %arg6[%c0_11, %c0_12] : memref<1x128xf32, #tpu.memory_space<vmem>>, vector<1x128xf32>
    %20 = vector.broadcast %19 : vector<1x128xf32> to vector<16x128xf32>
    %21 = arith.addf %18, %20 : vector<16x128xf32>
    %cst_13 = arith.constant 0.000000e+00 : f32
    %22 = vector.broadcast %cst_13 : f32 to vector<16x128xf32>
    %23 = arith.maximumf %21, %22 : vector<16x128xf32>
    %24 = arith.truncf %23 : vector<16x128xf32> to vector<16x128xbf16>
    %c0_14 = arith.constant 0 : index
    %c0_15 = arith.constant 0 : index
    %25 = vector.load %arg7[%c0_14, %c0_15] : memref<128x128xbf16, #tpu.memory_space<vmem>>, vector<128x128xbf16>
    %cst_16 = arith.constant dense<0.000000e+00> : vector<16x128xf32>
    %26 = tpu.matmul %24, %25, %cst_16 {dimension_numbers = #tpu.dot_dimension_numbers<[1], [0], [0], [1], [0, 0, 1, 1], [], []>} : vector<16x128xbf16>, vector<128x128xbf16>, vector<16x128xf32> -> vector<16x128xf32>
    %c0_17 = arith.constant 0 : index
    %c0_18 = arith.constant 0 : index
    %27 = vector.load %arg8[%c0_17, %c0_18] : memref<1x128xf32, #tpu.memory_space<vmem>>, vector<1x128xf32>
    %28 = vector.broadcast %27 : vector<1x128xf32> to vector<16x128xf32>
    %29 = arith.addf %26, %28 : vector<16x128xf32>
    %cst_19 = arith.constant 0.000000e+00 : f32
    %30 = vector.broadcast %cst_19 : f32 to vector<16x128xf32>
    %31 = arith.maximumf %29, %30 : vector<16x128xf32>
    %32 = arith.truncf %31 : vector<16x128xf32> to vector<16x128xbf16>
    %c0_20 = arith.constant 0 : index
    %c0_21 = arith.constant 0 : index
    %33 = vector.load %arg9[%c0_20, %c0_21] : memref<128x128xbf16, #tpu.memory_space<vmem>>, vector<128x128xbf16>
    %cst_22 = arith.constant dense<0.000000e+00> : vector<16x128xf32>
    %34 = tpu.matmul %32, %33, %cst_22 {dimension_numbers = #tpu.dot_dimension_numbers<[1], [0], [0], [1], [0, 0, 1, 1], [], []>} : vector<16x128xbf16>, vector<128x128xbf16>, vector<16x128xf32> -> vector<16x128xf32>
    %c0_23 = arith.constant 0 : index
    %c0_24 = arith.constant 0 : index
    %35 = vector.load %arg10[%c0_23, %c0_24] : memref<1x128xf32, #tpu.memory_space<vmem>>, vector<1x128xf32>
    %36 = vector.broadcast %35 : vector<1x128xf32> to vector<16x128xf32>
    %37 = arith.addf %34, %36 : vector<16x128xf32>
    %cst_25 = arith.constant 0.000000e+00 : f32
    %38 = vector.broadcast %cst_25 : f32 to vector<16x128xf32>
    %39 = arith.maximumf %37, %38 : vector<16x128xf32>
    %40 = vector.shape_cast %39 : vector<16x128xf32> to vector<2x8x128xf32>
    %cst_26 = arith.constant dense<0.000000e+00> : vector<2x128xf32>
    %41 = vector.multi_reduction <add>, %40, %cst_26 [1] : vector<2x8x128xf32> to vector<2x128xf32>
    %cst_27 = arith.constant 1.250000e-01 : f32
    %42 = vector.broadcast %cst_27 : f32 to vector<2x128xf32>
    %43 = arith.mulf %41, %42 : vector<2x128xf32>
    %c0_28 = arith.constant 0 : index
    %c0_29 = arith.constant 0 : index
    %44 = vector.load %arg11[%c0_28, %c0_29] : memref<2x128xf32, #tpu.memory_space<vmem>>, vector<2x128xf32>
    tpu.vector_store %arg11[%c0_28, %c0_29], %43 {strides = array<i32>} : memref<2x128xf32, #tpu.memory_space<vmem>>, vector<2x128xf32>,
    return
  }
  func.func @transform_0(%arg0: i32) -> (i32, i32) {
    %c0_i32 = arith.constant 0 : i32
    %c0_i32_0 = arith.constant 0 : i32
    return %arg0, %c0_i32 : i32, i32
  }
  func.func @transform_1(%arg0: i32) -> (i32, i32) {
    %c0_i32 = arith.constant 0 : i32
    %c0_i32_0 = arith.constant 0 : i32
    return %arg0, %c0_i32 : i32, i32
  }
  func.func @transform_2(%arg0: i32) -> (i32, i32) {
    %c0_i32 = arith.constant 0 : i32
    %c0_i32_0 = arith.constant 0 : i32
    %c0_i32_1 = arith.constant 0 : i32
    return %c0_i32, %c0_i32_0 : i32, i32
  }
  func.func @transform_3(%arg0: i32) -> (i32, i32) {
    %c0_i32 = arith.constant 0 : i32
    %c0_i32_0 = arith.constant 0 : i32
    %c0_i32_1 = arith.constant 0 : i32
    return %c0_i32, %c0_i32_0 : i32, i32
  }
  func.func @transform_4(%arg0: i32) -> (i32, i32) {
    %c0_i32 = arith.constant 0 : i32
    %c0_i32_0 = arith.constant 0 : i32
    %c0_i32_1 = arith.constant 0 : i32
    return %c0_i32, %c0_i32_0 : i32, i32
  }
  func.func @transform_5(%arg0: i32) -> (i32, i32) {
    %c0_i32 = arith.constant 0 : i32
    %c0_i32_0 = arith.constant 0 : i32
    %c0_i32_1 = arith.constant 0 : i32
    return %c0_i32, %c0_i32_0 : i32, i32
  }
  func.func @transform_6(%arg0: i32) -> (i32, i32) {
    %c0_i32 = arith.constant 0 : i32
    %c0_i32_0 = arith.constant 0 : i32
    %c0_i32_1 = arith.constant 0 : i32
    return %c0_i32, %c0_i32_0 : i32, i32
  }
  func.func @transform_7(%arg0: i32) -> (i32, i32) {
    %c0_i32 = arith.constant 0 : i32
    %c0_i32_0 = arith.constant 0 : i32
    %c0_i32_1 = arith.constant 0 : i32
    return %c0_i32, %c0_i32_0 : i32, i32
  }
  func.func @transform_8(%arg0: i32) -> (i32, i32) {
    %c0_i32 = arith.constant 0 : i32
    %c0_i32_0 = arith.constant 0 : i32
    %c0_i32_1 = arith.constant 0 : i32
    return %c0_i32, %c0_i32_0 : i32, i32
  }
  func.func @transform_9(%arg0: i32) -> (i32, i32) {
    %c0_i32 = arith.constant 0 : i32
    %c0_i32_0 = arith.constant 0 : i32
    %c0_i32_1 = arith.constant 0 : i32
    return %c0_i32, %c0_i32_0 : i32, i32
  }
  func.func @transform_10(%arg0: i32) -> (i32, i32) {
    %c0_i32 = arith.constant 0 : i32
    %c0_i32_0 = arith.constant 0 : i32
    return %arg0, %c0_i32 : i32, i32
  }
}

</mosaic_0001>

<bundles_post_ra>
// kernel: encoder_forward.1
= control target key start
LH: loop header
LB: loop body
LE: loop exit
PB: predicated region body
PF: predicated region fallthrough
CT: control target
= control target key end

     0   :  { %v525_v2 = vmov 0   ;;  %s687_s0 = inlined_call_operand.vmem [shape: f32[16,1], index: 0, kind: input, shape index: {}]   ;;  %s688_s1 = inlined_call_operand.vmem [shape: f32[16,1], index: 1, kind: input, shape index: {}]   ;;  %s689_s2 = inlined_call_operand.vmem [shape: f32[2,128], index: 2, kind: input, shape index: {}]   ;;  %s690_s3 = inlined_call_operand.vmem [shape: f32[1,128], index: 3, kind: input, shape index: {}]   ;;  %s691_s4 = inlined_call_operand.vmem [shape: bf16[128,128], index: 4, kind: input, shape index: {}]   ;;  %s692_s5 = inlined_call_operand.vmem [shape: f32[1,128], index: 5, kind: input, shape index: {}]   ;;  %s693_s6 = inlined_call_operand.vmem [shape: bf16[128,128], index: 6, kind: input, shape index: {}]   ;;  %s694_s7 = inlined_call_operand.vmem [shape: f32[1,128], index: 7, kind: input, shape index: {}]   ;;  %s695_s8 = inlined_call_operand.vmem [shape: bf16[128,128], index: 8, kind: input, shape index: {}]   ;;  %s696_s9 = inlined_call_operand.vmem [shape: f32[1,128], index: 9, kind: input, shape index: {}]   ;;  %s697_s10 = inlined_call_operand.hbm [shape: f32[2,128], index: 10, kind: output, shape index: {}]  }
   0x1   :  { %v38_v0 = vld [vmem:[%s688_s1] sm:$0xff]  ;;  %492 = vset.pattern.permute.xlu1 %v525_v2  ;;  %491 = vset.pattern.permute.xlu0 %v525_v2  ;;  %v472_v3 = vld [vmem:[%s691_s4 + $0x38] sm:$0xff]  ;;  %v471_v4 = vld [vmem:[%s691_s4 + $0x30] sm:$0xff] }
   0x2   :  { %v36_v1 = vld [vmem:[%s687_s0] sm:$0xff]  ;;  %57 = vperm.xlu1 %492, %v38_v0   ;;  %147 = vmatpush.bf16.msra.mxu0 %v472_v3 }
   0x3   :  { %43 = vperm.xlu0 %491, %v36_v1  }
   0x4   :  { %15 = vsyncpa [#allocation3], 0  ;;  %v39_v5 = vld [vmem:[%s688_s1 + $0x8] sm:$0xff]  ;;  %v469_v8 = vld [vmem:[%s691_s4 + $0x20] sm:$0xff]  ;;  %vm349_vm0 = vcmask 1041409  }
   0x5   :  { %v37_v6 = vld [vmem:[%s687_s0 + $0x8] sm:$0xff]  ;;  %v468_v9 = vld [vmem:[%s691_s4 + $0x18] sm:$0xff]  ;;  %v467_v10 = vld [vmem:[%s691_s4 + $0x10] sm:$0xff] }
   0x6   :  { %148 = vmatpush.bf16.msra.mxu0 %v471_v4  ;;  %v470_v7 = vld [vmem:[%s691_s4 + $0x28] sm:$0xff]  ;;  %v465_v12 = vld [vmem:[%s691_s4] sm:$0xff]  ;;  %v480_v13 = vld [vmem:[%s693_s6 + $0x38] sm:$0xff] }
   0x7   :  { %v466_v11 = vld [vmem:[%s691_s4 + $0x8] sm:$0xff]  ;;  %232 = vmatpush.bf16.msra.mxu1 %v480_v13  ;;  %v479_v14 = vld [vmem:[%s693_s6 + $0x30] sm:$0xff]  ;;  %v477_v16 = vld [vmem:[%s693_s6 + $0x20] sm:$0xff] }
   0x8   :  { %v478_v15 = vld [vmem:[%s693_s6 + $0x28] sm:$0xff]  ;;  %v493_v17 = vld [vmem:[%s689_s2 + $0x1] ss:$0 sm:$0xff]  ;;  %v494_v18 = vld [vmem:[%s689_s2] ss:$0 sm:$0xff] }
   0x9   :  { %v495_v24 = vld [vmem:[%s690_s3] ss:$0 sm:$0xff]  ;;  %v476_v35 = vld [vmem:[%s693_s6 + $0x18] sm:$0xff]  ;;  %v475_v36 = vld [vmem:[%s693_s6 + $0x10] sm:$0xff]  ;;  %s360_s3 = sshll.u32 %s697_s10, 4  ;;  %s361_s3 = int_to_ptr.hbm [resolvable:$true] %s360_s3 }
   0xa   :  { %62 = vperm.xlu1 %492, %v39_v5   ;;  %149 = vmatpush.bf16.msra.mxu0 %v470_v7  ;;  %v474_v37 = vld [vmem:[%s693_s6 + $0x8] sm:$0xff]  ;;  %v473_v38 = vld [vmem:[%s693_s6] sm:$0xff]  ;;  %v488_v39 = vld [vmem:[%s695_s8 + $0x38] sm:$0xff] }
   0xb   :  { %48 = vperm.xlu0 %491, %v37_v6   ;;  %233 = vmatpush.bf16.msra.mxu1 %v479_v14  ;;  %v487_v40 = vld [vmem:[%s695_s8 + $0x30] sm:$0xff]  ;;  %v486_v41 = vld [vmem:[%s695_s8 + $0x28] sm:$0xff]  ;;  %v485_v42 = vld [vmem:[%s695_s8 + $0x20] sm:$0xff] }
   0xc   :  { %317 = vmatpush.bf16.msra.mxu2 %v488_v39  ;;  %v496_v44 = vld [vmem:[%s692_s5] ss:$0 sm:$0xff]  ;;  %v484_v51 = vld [vmem:[%s695_s8 + $0x18] sm:$0xff]  ;;  %v483_v52 = vld [vmem:[%s695_s8 + $0x10] sm:$0xff] }
   0xd   :  { %v482_v53 = vld [vmem:[%s695_s8 + $0x8] sm:$0xff]  ;;  %v481_v54 = vld [vmem:[%s695_s8] sm:$0xff] }
   0xe   :  { %150 = vmatpush.bf16.msra.mxu0 %v469_v8  ;;  %v497_v56 = vld [vmem:[%s694_s7] ss:$0 sm:$0xff]  ;;  %s526_s7 = smov [#allocation2]  }
   0xf   :  { %234 = vmatpush.bf16.msra.mxu1 %v478_v15  ;;  %v498_v63 = vld [vmem:[%s696_s9] ss:$0 sm:$0xff]  ;;  %s358_s8 = sshll.u32 %s526_s7, 4  ;;  %s359_s8 = int_to_ptr.vmem [resolvable:$true] %s358_s8 }
  0x10   :  { %318 = vmatpush.bf16.msra.mxu2 %v487_v40 }
  0x12   :  { %151 = vmatpush.bf16.msra.mxu0 %v468_v9 }
  0x13   :  { %235 = vmatpush.bf16.msra.mxu1 %v477_v16 }
  0x14   :  { %319 = vmatpush.bf16.msra.mxu2 %v486_v41 }
  0x16   :  { %152 = vmatpush.bf16.msra.mxu0 %v467_v10 }
  0x17   :  { %236 = vmatpush.bf16.msra.mxu1 %v476_v35 }
  0x18   :  { %320 = vmatpush.bf16.msra.mxu2 %v485_v42 }
  0x1a   :  { %153 = vmatpush.bf16.msra.mxu0 %v466_v11 }
  0x1b   :  { %237 = vmatpush.bf16.msra.mxu1 %v475_v36 }
  0x1c   :  { %321 = vmatpush.bf16.msra.mxu2 %v484_v51 }
  0x1e   :  { %154 = vmatpush.bf16.msra.mxu0 %v465_v12 }
  0x1f   :  { %238 = vmatpush.bf16.msra.mxu1 %v474_v37 }
  0x20   :  { %322 = vmatpush.bf16.msra.mxu2 %v483_v52 }
  0x23   :  { %239 = vmatpush.bf16.msra.mxu1 %v473_v38 }
  0x24   :  { %323 = vmatpush.bf16.msra.mxu2 %v482_v53 }
  0x28   :  { %324 = vmatpush.bf16.msra.mxu2 %v481_v54 }
  0x74   :  { %v58_v19 = vpop.permute.xlu1 %57 }
  0x75   :  { %v44_v20 = vpop.permute.xlu0 %43  ;;  %v66_v21 = vmul.f32 %v493_v17, %v58_v19 }
  0x76   :  { %v52_v22 = vmul.f32 %v494_v18, %v44_v20 }
  0x78   :  { %v68_v23 = vadd.f32 %v66_v21, %v52_v22 }
  0x7a   :  { %v74_v30 = vadd.f32 %v495_v24, %v68_v23 }
  0x7c   :  { %v63_v25 = vpop.permute.xlu1 %62  ;;  %v76_v32 = vmax.f32 %v74_v30, 0.0 }
  0x7d   :  { %v49_v26 = vpop.permute.xlu0 %48  ;;  %v67_v27 = vmul.f32 %v493_v17, %v63_v25 }
  0x7e   :  { %v53_v28 = vmul.f32 %v494_v18, %v49_v26 }
  0x80   :  { %v69_v29 = vadd.f32 %v67_v27, %v53_v28 }
  0x82   :  { %v75_v31 = vadd.f32 %v495_v24, %v69_v29 }
  0x84   :  { %v77_v33 = vmax.f32 %v75_v31, 0.0 }
  0x86   :  { %v78_v34 = vpack.c.bf16 %v77_v33, %v76_v32 }
  0x88   :  { %155 = vmatmul.bf16.vlgmr.msra.gmra.mxu0 %v78_v34 }
 0x105   :  { %v156_v43 = vpop.f32.mrf.mxu0 }
 0x106   :  { %v157_v45 = vadd.f32 %v496_v44, %v156_v43 }
 0x108   :  { %v161_v48 = vmax.f32 %v157_v45, 0.0 }
 0x10d   :  { %v158_v46 = vpop.f32.mrf.mxu0 }
 0x10e   :  { %v159_v47 = vadd.f32 %v496_v44, %v158_v46 }
 0x110   :  { %v162_v49 = vmax.f32 %v159_v47, 0.0 }
 0x112   :  { %v163_v50 = vpack.c.bf16 %v162_v49, %v161_v48 }
 0x114   :  { %240 = vmatmul.bf16.vlgmr.msra.gmra.mxu1 %v163_v50 }
 0x191   :  { %v241_v55 = vpop.f32.mrf.mxu1 }
 0x192   :  { %v242_v57 = vadd.f32 %v497_v56, %v241_v55 }
 0x194   :  { %v246_v60 = vmax.f32 %v242_v57, 0.0 }
 0x199   :  { %v243_v58 = vpop.f32.mrf.mxu1 }
 0x19a   :  { %v244_v59 = vadd.f32 %v497_v56, %v243_v58 }
 0x19c   :  { %v247_v61 = vmax.f32 %v244_v59, 0.0 }
 0x19e   :  { %v248_v62 = vpack.c.bf16 %v247_v61, %v246_v60 }
 0x1a0   :  { %325 = vmatmul.bf16.vlgmr.msra.gmra.mxu2 %v248_v62 }
 0x223   :  { %v326_v0 = vpop.f32.mrf.mxu2 }
 0x224   :  { %v327_v1 = vadd.f32 %v498_v63, %v326_v0 }
 0x226   :  { %v331_v2 = vmax.f32 %v327_v1, 0.0 }
 0x228   :  { %v333_v3 = vrot.slane %v331_v2, 4 }
 0x22a   :  { %v334_v4 = vadd.f32 %v333_v3, %v331_v2 }
 0x22b   :  { %v328_v5 = vpop.f32.mrf.mxu2 }
 0x22c   :  { %v335_v6 = vrot.slane %v334_v4, 2  ;;  %v329_v7 = vadd.f32 %v498_v63, %v328_v5 }
 0x22e   :  { %v332_v8 = vmax.f32 %v329_v7, 0.0  ;;  %v336_v9 = vadd.f32 %v335_v6, %v334_v4 }
 0x230   :  { %v339_v10 = vrot.slane %v332_v8, 4  ;;  %v337_v12 = vrot.slane %v336_v9, 1 }
 0x232   :  { %v340_v11 = vadd.f32 %v339_v10, %v332_v8  ;;  %v338_v15 = vadd.f32 %v337_v12, %v336_v9 }
 0x234   :  { %v341_v13 = vrot.slane %v340_v11, 2  ;;  %v345_v18 = vmul.f32 0.125, %v338_v15 }
 0x236   :  { %v342_v14 = vadd.f32 %v341_v13, %v340_v11 }
 0x238   :  { %v343_v16 = vrot.slane %v342_v14, 1 }
 0x23a   :  { %v344_v17 = vadd.f32 %v343_v16, %v342_v14 }
 0x23c   :  { %v346_v19 = vmul.f32 0.125, %v344_v17 }
 0x23e   :  { %v350_v20 = vsel %vm349_vm0, %v346_v19, %v345_v18 }
 0x23f   :  { %352 = vst [vmem:[#allocation2] sm:$0x3] %v350_v20 }
 0x240   :  { %363 = dma.vmem_to_hbm [thread:$0]  %s359_s8, 32, %s361_s3, [#allocation3]  }
 0x241   :  { %523 = dma.done.wait [#allocation3], 32  }
 0x242   :  { %524 = vsyncadd [#allocation3], 4294967264 }
 0x243   :  { %368 = vsyncpa [#allocation3], 1 }

</bundles_post_ra>
